<compile_context>
chip_gen: v6e
topology: v6e:2x2x1
jax: 0.10.0
libtpu: 0.0.40
codegen_flags: <defaults>
</compile_context>

<pallas_src>
import jax
import jax.numpy as jnp
from jax import lax
from jax.experimental import pallas as pl
from jax.experimental.pallas import tpu as pltpu

_SQRT_HALF = 0.7071067811865476


def _erf(z):
    # Abramowitz & Stegun 7.1.26 (|err| <= 1.5e-7). Only mul/add/exp plus an EUP
    # approximate reciprocal, all of which lower cleanly on the TPU VPU/EUP.
    a1, a2, a3, a4, a5 = (0.254829592, -0.284496736, 1.421413741,
                          -1.453152027, 1.061405429)
    p = 0.3275911
    za = jnp.abs(z)
    t = pl.reciprocal(1.0 + p * za, approx=True)
    poly = ((((a5 * t + a4) * t + a3) * t + a2) * t + a1) * t
    r = 1.0 - poly * jnp.exp(-za * za)
    return jnp.where(z < 0.0, -r, r)


def _gelu_exact(x):
    # Matches PyTorch nn.GELU() (erf form).
    # TODO(synk): switch to lax.erf once Mosaic guarantees erf lowering.
    return 0.5 * x * (1.0 + _erf(x * _SQRT_HALF))


# ------------------------------- kernels ----------------------------------- #

def _mlp_resident_kernel(x_ref, w1_ref, b1_ref, w2_ref, b2_ref, o_ref):
    # x_ref (tm, d_in); w1 (d_in, hidden); b1 (1, hidden) f32;
    # w2 (hidden, d_out); b2 (1, d_out) f32; o (tm, d_out).
    h = jnp.dot(x_ref[...], w1_ref[...], preferred_element_type=jnp.float32)
    h = _gelu_exact(h + b1_ref[...])                       # f32 epilogue
    y = jnp.dot(h.astype(w2_ref.dtype), w2_ref[...],
                preferred_element_type=jnp.float32)
    o_ref[...] = (y + b2_ref[...]).astype(o_ref.dtype)


def _mlp_stream_kernel(x_ref, w1_ref, b1_ref, w2_ref, b2_ref, o_ref, acc_ref):
    # Grid = (row tiles [parallel], hidden tiles [arbitrary, innermost]).
    # Per step: h_k = gelu(x @ w1[:, k] + b1[k]);  acc += h_k @ w2[k, :].
    k = pl.program_id(1)

    @pl.when(k == 0)
    def _():
        acc_ref[...] = jnp.zeros_like(acc_ref)

    h = jnp.dot(x_ref[...], w1_ref[...], preferred_element_type=jnp.float32)
    h = _gelu_exact(h + b1_ref[...])
    acc_ref[...] += jnp.dot(h.astype(w2_ref.dtype), w2_ref[...],
                            preferred_element_type=jnp.float32)

    @pl.when(k == pl.num_programs(1) - 1)
    def _():
        o_ref[...] = (acc_ref[...] + b2_ref[...]).astype(o_ref.dtype)


# ------------------------------- wrapper ------------------------------------ #

def _weight_spec(shape, index_map, single_buffer):
    """Constant-index blocks are fetched once; single-buffering halves their VMEM."""
    if single_buffer and hasattr(pl, "Buffered"):
        try:
            return pl.BlockSpec(shape, index_map, pipeline_mode=pl.Buffered(1))
        except TypeError:
            pass
    return pl.BlockSpec(shape, index_map)


def mlp_forward(x, w1, b1, w2, b2, *, block_rows=256, block_hidden=None):
    """x: (..., d_in); w1: (d_in, hidden); b1: (hidden,); w2: (hidden, d_out); b2: (d_out,)."""
    *lead, d_in = x.shape
    hidden, d_out = w1.shape[1], w2.shape[1]
    x2 = x.reshape(-1, d_in)
    m = x2.shape[0]
    out_dtype = x.dtype

    # Row tile: >=256 keeps the 256-wide MXU (v6e/v7x) fed; small inputs use all rows.
    if m <= block_rows:
        tm = m
    else:
        tm = max(8, (min(block_rows, m) // 8) * 8)
    grid_m = pl.cdiv(m, tm)

    # Biases kept in f32: bias-add / GELU happen on the f32 accumulator.
    b1r = b1.reshape(1, hidden).astype(jnp.float32)
    b2r = b2.reshape(1, d_out).astype(jnp.float32)

    w_item = jnp.dtype(w1.dtype).itemsize
    x_item = jnp.dtype(x.dtype).itemsize
    o_item = jnp.dtype(out_dtype).itemsize

    # VMEM budget (generation-aware): 64 MiB per core on v7x, 128 MiB on v5e/v6e.
    try:
        vmem_cap = int(pltpu.get_tpu_info().vmem_capacity_bytes)
    except Exception:
        vmem_cap = 64 * 1024 * 1024
    vmem_budget = int(vmem_cap * 0.75)

    cost = pl.CostEstimate(
        flops=2 * m * (d_in * hidden + hidden * d_out),
        transcendentals=m * hidden,  # one exp per hidden activation
        bytes_accessed=(m * d_in * x_item + m * d_out * o_item
                        + (d_in * hidden + hidden * d_out) * w_item
                        + (hidden + d_out) * 4),
    )

    # Resident-path working set: single-buffered weights + double-buffered row
    # tiles + the (tm, hidden) f32 intermediate.
    resident_bytes = ((d_in * hidden + hidden * d_out) * w_item
                      + (hidden + d_out) * 4
                      + 2 * tm * d_in * x_item
                      + 2 * tm * d_out * o_item
                      + tm * hidden * 4)

    use_streaming = (block_hidden is not None) or (resident_bytes > vmem_budget)
    if use_streaming and hidden % 128 != 0:
        # TODO(synk): hidden streaming needs a lane-aligned hidden tile; odd hidden
        # sizes fall back to the resident path.
        use_streaming = False

    def run(single_buffer_weights):
        if not use_streaming:
            in_specs = [
                pl.BlockSpec((tm, d_in), lambda i: (i, 0)),
                _weight_spec((d_in, hidden), lambda i: (0, 0), single_buffer_weights),
                _weight_spec((1, hidden), lambda i: (0, 0), single_buffer_weights),
                _weight_spec((hidden, d_out), lambda i: (0, 0), single_buffer_weights),
                _weight_spec((1, d_out), lambda i: (0, 0), single_buffer_weights),
            ]
            return pl.pallas_call(
                _mlp_resident_kernel,
                out_shape=jax.ShapeDtypeStruct((m, d_out), out_dtype),
                grid=(grid_m,),
                in_specs=in_specs,
                out_specs=pl.BlockSpec((tm, d_out), lambda i: (i, 0)),
                compiler_params=pltpu.CompilerParams(
                    dimension_semantics=("parallel",),
                    vmem_limit_bytes=vmem_budget),
                cost_estimate=cost,
            )(x2, w1, b1r, w2, b2r)

        # Hidden-streaming path: pick a lane-aligned hidden tile that divides hidden
        # and whose per-step working set fits the budget.
        tk = hidden if block_hidden is None else min(block_hidden, hidden)
        tk = max(128, (tk // 128) * 128)

        def step_bytes(tk_):
            return (2 * (d_in * tk_ + tk_ * d_out) * w_item    # double-buffered weight tiles
                    + 2 * tk_ * 4 + d_out * 4                  # bias tiles
                    + 2 * tm * d_in * x_item                   # x tile (double-buffered)
                    + 2 * tm * d_out * o_item                  # out tile
                    + tm * d_out * 4                           # f32 accumulator
                    + tm * tk_ * 4)                            # f32 h intermediate

        while tk > 128 and (step_bytes(tk) > vmem_budget or hidden % tk != 0):
            tk -= 128

        grid = (grid_m, hidden // tk)
        in_specs = [
            pl.BlockSpec((tm, d_in), lambda i, k: (i, 0)),
            pl.BlockSpec((d_in, tk), lambda i, k: (0, k)),
            pl.BlockSpec((1, tk), lambda i, k: (0, k)),
            pl.BlockSpec((tk, d_out), lambda i, k: (k, 0)),
            _weight_spec((1, d_out), lambda i, k: (0, 0), single_buffer_weights),
        ]
        return pl.pallas_call(
            _mlp_stream_kernel,
            out_shape=jax.ShapeDtypeStruct((m, d_out), out_dtype),
            grid=grid,
            in_specs=in_specs,
            out_specs=pl.BlockSpec((tm, d_out), lambda i, k: (i, 0)),
            scratch_shapes=[pltpu.VMEM((tm, d_out), jnp.float32)],
            compiler_params=pltpu.CompilerParams(
                dimension_semantics=("parallel", "arbitrary"),
                vmem_limit_bytes=vmem_budget),
            cost_estimate=cost,
        )(x2, w1, b1r, w2, b2r)

    try:
        out = run(True)
    except Exception:
        # Fallback if this JAX build rejects single-buffered (Buffered(1)) specs.
        out = run(False)

    return out.reshape(*lead, d_out)


def mlp_ref(x, w1, b1, w2, b2):
    """Pure-JAX reference mirroring the PyTorch module (exact-erf GELU)."""
    h = jnp.dot(x, w1, precision=lax.Precision.HIGHEST) + b1
    h = jax.nn.gelu(h, approximate=False)
    return jnp.dot(h, w2, precision=lax.Precision.HIGHEST) + b2


if __name__ == "__main__":
    key = jax.random.PRNGKey(0)
    k_x, k_w1, k_b1, k_w2, k_b2 = jax.random.split(key, 5)

    # Small shapes, lane-dense (feature dims are multiples of 128).
    batch, seq = 2, 8
    in_features, hidden_features, out_features = 128, 256, 128

    x = jax.random.normal(k_x, (batch, seq, in_features), dtype=jnp.float32)

    # PyTorch nn.Linear default init: U(-1/sqrt(fan_in), 1/sqrt(fan_in)).
    k1 = 1.0 / (in_features ** 0.5)
    k2 = 1.0 / (hidden_features ** 0.5)
    w1 = jax.random.uniform(k_w1, (in_features, hidden_features), jnp.float32, -k1, k1)
    b1 = jax.random.uniform(k_b1, (hidden_features,), jnp.float32, -k1, k1)
    w2 = jax.random.uniform(k_w2, (hidden_features, out_features), jnp.float32, -k2, k2)
    b2 = jax.random.uniform(k_b2, (out_features,), jnp.float32, -k2, k2)

    ref = mlp_ref(x, w1, b1, w2, b2)

    # 1) Resident path (weights live in VMEM across the row grid).
    out = jax.block_until_ready(mlp_forward(x, w1, b1, w2, b2))
    assert out.shape == (batch, seq, out_features)
    err = jnp.max(jnp.abs(out - ref))
    assert jnp.allclose(out, ref, atol=5e-3, rtol=5e-3), f"resident max err {err}"

    # 2) Hidden-streaming path (block_rows=8, block_hidden=128 -> grid (2, 2));
    #    this is the accumulator kernel v7x-sized MLPs would pick automatically.
    out_s = jax.block_until_ready(
        mlp_forward(x, w1, b1, w2, b2, block_rows=8, block_hidden=128))
    err_s = jnp.max(jnp.abs(out_s - ref))
    assert jnp.allclose(out_s, ref, atol=5e-3, rtol=5e-3), f"streaming max err {err_s}"

    # 3) bf16 operands with f32 accumulation (recommended production dtype).
    out_b = jax.block_until_ready(
        mlp_forward(x.astype(jnp.bfloat16), w1.astype(jnp.bfloat16), b1,
                    w2.astype(jnp.bfloat16), b2))
    err_b = jnp.max(jnp.abs(out_b.astype(jnp.float32) - ref))
    assert jnp.allclose(out_b.astype(jnp.float32), ref, atol=5e-2, rtol=5e-2), \
        f"bf16 max err {err_b}"

    print("KERNEL_OK")
</pallas_src>

<mosaic_0001>
module attributes {stable_mosaic.version = 11 : i64} {
  func.func @_mlp_resident_kernel(%arg0: i32, %arg1: memref<16x128xf32, #tpu.memory_space<vmem>>, %arg2: memref<128x256xf32, #tpu.memory_space<vmem>>, %arg3: memref<1x256xf32, #tpu.memory_space<vmem>>, %arg4: memref<256x128xf32, #tpu.memory_space<vmem>>, %arg5: memref<1x128xf32, #tpu.memory_space<vmem>>, %arg6: memref<16x128xf32, #tpu.memory_space<vmem>>) attributes {dimension_semantics = [#tpu.dimension_semantics<parallel>], iteration_bounds = array<i64: 1>, scalar_prefetch = 0 : i64, scratch_operands = 0 : i64, tpu.core_type = #tpu.core_type<tc>, window_params = [{transform_indices = @transform_0, window_bounds = array<i64: 16, 128>}, {pipeline_mode = #tpu.pipeline_mode<synchronous>, transform_indices = @transform_1, window_bounds = array<i64: 128, 256>}, {pipeline_mode = #tpu.pipeline_mode<synchronous>, transform_indices = @transform_2, window_bounds = array<i64: 1, 256>}, {pipeline_mode = #tpu.pipeline_mode<synchronous>, transform_indices = @transform_3, window_bounds = array<i64: 256, 128>}, {pipeline_mode = #tpu.pipeline_mode<synchronous>, transform_indices = @transform_4, window_bounds = array<i64: 1, 128>}, {transform_indices = @transform_5, window_bounds = array<i64: 16, 128>}]} {
    %c0 = arith.constant 0 : index
    %c0_0 = arith.constant 0 : index
    %0 = vector.load %arg1[%c0, %c0_0] : memref<16x128xf32, #tpu.memory_space<vmem>>, vector<16x128xf32>
    %c0_1 = arith.constant 0 : index
    %c0_2 = arith.constant 0 : index
    %1 = vector.load %arg2[%c0_1, %c0_2] : memref<128x256xf32, #tpu.memory_space<vmem>>, vector<128x256xf32>
    %cst = arith.constant dense<0.000000e+00> : vector<16x256xf32>
    %2 = tpu.matmul %0, %1, %cst {dimension_numbers = #tpu.dot_dimension_numbers<[1], [0], [0], [1], [0, 0, 1, 1], [], []>} : vector<16x128xf32>, vector<128x256xf32>, vector<16x256xf32> -> vector<16x256xf32>
    %c0_3 = arith.constant 0 : index
    %c0_4 = arith.constant 0 : index
    %3 = vector.load %arg3[%c0_3, %c0_4] : memref<1x256xf32, #tpu.memory_space<vmem>>, vector<1x256xf32>
    %4 = vector.broadcast %3 : vector<1x256xf32> to vector<16x256xf32>
    %5 = arith.addf %2, %4 : vector<16x256xf32>
    %cst_5 = arith.constant 5.000000e-01 : f32
    %6 = vector.broadcast %cst_5 : f32 to vector<16x256xf32>
    %7 = arith.mulf %6, %5 : vector<16x256xf32>
    %cst_6 = arith.constant 0.707106769 : f32
    %8 = vector.broadcast %cst_6 : f32 to vector<16x256xf32>
    %9 = arith.mulf %5, %8 : vector<16x256xf32>
    %10 = math.absf %9 : vector<16x256xf32>
    %cst_7 = arith.constant 0.327591091 : f32
    %11 = vector.broadcast %cst_7 : f32 to vector<16x256xf32>
    %12 = arith.mulf %11, %10 : vector<16x256xf32>
    %cst_8 = arith.constant 1.000000e+00 : f32
    %13 = vector.broadcast %cst_8 : f32 to vector<16x256xf32>
    %14 = arith.addf %13, %12 : vector<16x256xf32>
    %15 = tpu.reciprocal %14 {approx = true} : vector<16x256xf32> -> vector<16x256xf32>
    %cst_9 = arith.constant 1.06140542 : f32
    %16 = vector.broadcast %cst_9 : f32 to vector<16x256xf32>
    %17 = arith.mulf %16, %15 : vector<16x256xf32>
    %cst_10 = arith.constant -1.45315206 : f32
    %18 = vector.broadcast %cst_10 : f32 to vector<16x256xf32>
    %19 = arith.addf %17, %18 : vector<16x256xf32>
    %20 = arith.mulf %19, %15 : vector<16x256xf32>
    %cst_11 = arith.constant 1.42141378 : f32
    %21 = vector.broadcast %cst_11 : f32 to vector<16x256xf32>
    %22 = arith.addf %20, %21 : vector<16x256xf32>
    %23 = arith.mulf %22, %15 : vector<16x256xf32>
    %cst_12 = arith.constant -0.284496725 : f32
    %24 = vector.broadcast %cst_12 : f32 to vector<16x256xf32>
    %25 = arith.addf %23, %24 : vector<16x256xf32>
    %26 = arith.mulf %25, %15 : vector<16x256xf32>
    %cst_13 = arith.constant 0.254829586 : f32
    %27 = vector.broadcast %cst_13 : f32 to vector<16x256xf32>
    %28 = arith.addf %26, %27 : vector<16x256xf32>
    %29 = arith.mulf %28, %15 : vector<16x256xf32>
    %cst_14 = arith.constant 0.000000e+00 : f32
    %30 = vector.broadcast %cst_14 : f32 to vector<16x256xf32>
    %31 = arith.subf %30, %10 : vector<16x256xf32>
    %32 = arith.mulf %31, %10 : vector<16x256xf32>
    %33 = math.exp %32 : vector<16x256xf32>
    %34 = arith.mulf %29, %33 : vector<16x256xf32>
    %cst_15 = arith.constant 1.000000e+00 : f32
    %35 = vector.broadcast %cst_15 : f32 to vector<16x256xf32>
    %36 = arith.subf %35, %34 : vector<16x256xf32>
    %cst_16 = arith.constant 0.000000e+00 : f32
    %37 = vector.broadcast %cst_16 : f32 to vector<16x256xf32>
    %38 = arith.cmpf olt, %9, %37 : vector<16x256xf32>
    %cst_17 = arith.constant 0.000000e+00 : f32
    %39 = vector.broadcast %cst_17 : f32 to vector<16x256xf32>
    %40 = arith.subf %39, %36 : vector<16x256xf32>
    %41 = arith.select %38, %40, %36 : vector<16x256xi1>, vector<16x256xf32>
    %cst_18 = arith.constant 1.000000e+00 : f32
    %42 = vector.broadcast %cst_18 : f32 to vector<16x256xf32>
    %43 = arith.addf %42, %41 : vector<16x256xf32>
    %44 = arith.mulf %7, %43 : vector<16x256xf32>
    %c0_19 = arith.constant 0 : index
    %c0_20 = arith.constant 0 : index
    %45 = vector.load %arg4[%c0_19, %c0_20] : memref<256x128xf32, #tpu.memory_space<vmem>>, vector<256x128xf32>
    %cst_21 = arith.constant dense<0.000000e+00> : vector<16x128xf32>
    %46 = tpu.matmul %44, %45, %cst_21 {dimension_numbers = #tpu.dot_dimension_numbers<[1], [0], [0], [1], [0, 0, 1, 1], [], []>} : vector<16x256xf32>, vector<256x128xf32>, vector<16x128xf32> -> vector<16x128xf32>
    %c0_22 = arith.constant 0 : index
    %c0_23 = arith.constant 0 : index
    %47 = vector.load %arg5[%c0_22, %c0_23] : memref<1x128xf32, #tpu.memory_space<vmem>>, vector<1x128xf32>
    %48 = vector.broadcast %47 : vector<1x128xf32> to vector<16x128xf32>
    %49 = arith.addf %46, %48 : vector<16x128xf32>
    %c0_24 = arith.constant 0 : index
    %c0_25 = arith.constant 0 : index
    %50 = vector.load %arg6[%c0_24, %c0_25] : memref<16x128xf32, #tpu.memory_space<vmem>>, vector<16x128xf32>
    tpu.vector_store %arg6[%c0_24, %c0_25], %49 {strides = array<i32>} : memref<16x128xf32, #tpu.memory_space<vmem>>, vector<16x128xf32>,
    return
  }
  func.func @transform_0(%arg0: i32) -> (i32, i32) {
    %c0_i32 = arith.constant 0 : i32
    %c0_i32_0 = arith.constant 0 : i32
    return %arg0, %c0_i32 : i32, i32
  }
  func.func @transform_1(%arg0: i32) -> (i32, i32) {
    %c0_i32 = arith.constant 0 : i32
    %c0_i32_0 = arith.constant 0 : i32
    %c0_i32_1 = arith.constant 0 : i32
    return %c0_i32, %c0_i32_0 : i32, i32
  }
  func.func @transform_2(%arg0: i32) -> (i32, i32) {
    %c0_i32 = arith.constant 0 : i32
    %c0_i32_0 = arith.constant 0 : i32
    %c0_i32_1 = arith.constant 0 : i32
    return %c0_i32, %c0_i32_0 : i32, i32
  }
  func.func @transform_3(%arg0: i32) -> (i32, i32) {
    %c0_i32 = arith.constant 0 : i32
    %c0_i32_0 = arith.constant 0 : i32
    %c0_i32_1 = arith.constant 0 : i32
    return %c0_i32, %c0_i32_0 : i32, i32
  }
  func.func @transform_4(%arg0: i32) -> (i32, i32) {
    %c0_i32 = arith.constant 0 : i32
    %c0_i32_0 = arith.constant 0 : i32
    %c0_i32_1 = arith.constant 0 : i32
    return %c0_i32, %c0_i32_0 : i32, i32
  }
  func.func @transform_5(%arg0: i32) -> (i32, i32) {
    %c0_i32 = arith.constant 0 : i32
    %c0_i32_0 = arith.constant 0 : i32
    return %arg0, %c0_i32 : i32, i32
  }
}

module attributes {stable_mosaic.version = 11 : i64} {
  func.func @_mlp_resident_kernel(%arg0: i32, %arg1: memref<16x128xf32, #tpu.memory_space<vmem>>, %arg2: memref<128x256xf32, #tpu.memory_space<vmem>>, %arg3: memref<1x256xf32, #tpu.memory_space<vmem>>, %arg4: memref<256x128xf32, #tpu.memory_space<vmem>>, %arg5: memref<1x128xf32, #tpu.memory_space<vmem>>, %arg6: memref<16x128xf32, #tpu.memory_space<vmem>>) attributes {dimension_semantics = [#tpu.dimension_semantics<parallel>], iteration_bounds = array<i64: 1>, scalar_prefetch = 0 : i64, scratch_operands = 0 : i64, tpu.core_type = #tpu.core_type<tc>, window_params = [{transform_indices = @transform_0, window_bounds = array<i64: 16, 128>}, {pipeline_mode = #tpu.pipeline_mode<synchronous>, transform_indices = @transform_1, window_bounds = array<i64: 128, 256>}, {pipeline_mode = #tpu.pipeline_mode<synchronous>, transform_indices = @transform_2, window_bounds = array<i64: 1, 256>}, {pipeline_mode = #tpu.pipeline_mode<synchronous>, transform_indices = @transform_3, window_bounds = array<i64: 256, 128>}, {pipeline_mode = #tpu.pipeline_mode<synchronous>, transform_indices = @transform_4, window_bounds = array<i64: 1, 128>}, {transform_indices = @transform_5, window_bounds = array<i64: 16, 128>}]} {
    %c0 = arith.constant 0 : index
    %c0_0 = arith.constant 0 : index
    %0 = vector.load %arg1[%c0, %c0_0] : memref<16x128xf32, #tpu.memory_space<vmem>>, vector<16x128xf32>
    %c0_1 = arith.constant 0 : index
    %c0_2 = arith.constant 0 : index
    %1 = vector.load %arg2[%c0_1, %c0_2] : memref<128x256xf32, #tpu.memory_space<vmem>>, vector<128x256xf32>
    %cst = arith.constant dense<0.000000e+00> : vector<16x256xf32>
    %2 = tpu.matmul %0, %1, %cst {dimension_numbers = #tpu.dot_dimension_numbers<[1], [0], [0], [1], [0, 0, 1, 1], [], []>} : vector<16x128xf32>, vector<128x256xf32>, vector<16x256xf32> -> vector<16x256xf32>
    %c0_3 = arith.constant 0 : index
    %c0_4 = arith.constant 0 : index
    %3 = vector.load %arg3[%c0_3, %c0_4] : memref<1x256xf32, #tpu.memory_space<vmem>>, vector<1x256xf32>
    %4 = vector.broadcast %3 : vector<1x256xf32> to vector<16x256xf32>
    %5 = arith.addf %2, %4 : vector<16x256xf32>
    %cst_5 = arith.constant 5.000000e-01 : f32
    %6 = vector.broadcast %cst_5 : f32 to vector<16x256xf32>
    %7 = arith.mulf %6, %5 : vector<16x256xf32>
    %cst_6 = arith.constant 0.707106769 : f32
    %8 = vector.broadcast %cst_6 : f32 to vector<16x256xf32>
    %9 = arith.mulf %5, %8 : vector<16x256xf32>
    %10 = math.absf %9 : vector<16x256xf32>
    %cst_7 = arith.constant 0.327591091 : f32
    %11 = vector.broadcast %cst_7 : f32 to vector<16x256xf32>
    %12 = arith.mulf %11, %10 : vector<16x256xf32>
    %cst_8 = arith.constant 1.000000e+00 : f32
    %13 = vector.broadcast %cst_8 : f32 to vector<16x256xf32>
    %14 = arith.addf %13, %12 : vector<16x256xf32>
    %15 = tpu.reciprocal %14 {approx = true} : vector<16x256xf32> -> vector<16x256xf32>
    %cst_9 = arith.constant 1.06140542 : f32
    %16 = vector.broadcast %cst_9 : f32 to vector<16x256xf32>
    %17 = arith.mulf %16, %15 : vector<16x256xf32>
    %cst_10 = arith.constant -1.45315206 : f32
    %18 = vector.broadcast %cst_10 : f32 to vector<16x256xf32>
    %19 = arith.addf %17, %18 : vector<16x256xf32>
    %20 = arith.mulf %19, %15 : vector<16x256xf32>
    %cst_11 = arith.constant 1.42141378 : f32
    %21 = vector.broadcast %cst_11 : f32 to vector<16x256xf32>
    %22 = arith.addf %20, %21 : vector<16x256xf32>
    %23 = arith.mulf %22, %15 : vector<16x256xf32>
    %cst_12 = arith.constant -0.284496725 : f32
    %24 = vector.broadcast %cst_12 : f32 to vector<16x256xf32>
    %25 = arith.addf %23, %24 : vector<16x256xf32>
    %26 = arith.mulf %25, %15 : vector<16x256xf32>
    %cst_13 = arith.constant 0.254829586 : f32
    %27 = vector.broadcast %cst_13 : f32 to vector<16x256xf32>
    %28 = arith.addf %26, %27 : vector<16x256xf32>
    %29 = arith.mulf %28, %15 : vector<16x256xf32>
    %cst_14 = arith.constant 0.000000e+00 : f32
    %30 = vector.broadcast %cst_14 : f32 to vector<16x256xf32>
    %31 = arith.subf %30, %10 : vector<16x256xf32>
    %32 = arith.mulf %31, %10 : vector<16x256xf32>
    %33 = math.exp %32 : vector<16x256xf32>
    %34 = arith.mulf %29, %33 : vector<16x256xf32>
    %cst_15 = arith.constant 1.000000e+00 : f32
    %35 = vector.broadcast %cst_15 : f32 to vector<16x256xf32>
    %36 = arith.subf %35, %34 : vector<16x256xf32>
    %cst_16 = arith.constant 0.000000e+00 : f32
    %37 = vector.broadcast %cst_16 : f32 to vector<16x256xf32>
    %38 = arith.cmpf olt, %9, %37 : vector<16x256xf32>
    %cst_17 = arith.constant 0.000000e+00 : f32
    %39 = vector.broadcast %cst_17 : f32 to vector<16x256xf32>
    %40 = arith.subf %39, %36 : vector<16x256xf32>
    %41 = arith.select %38, %40, %36 : vector<16x256xi1>, vector<16x256xf32>
    %cst_18 = arith.constant 1.000000e+00 : f32
    %42 = vector.broadcast %cst_18 : f32 to vector<16x256xf32>
    %43 = arith.addf %42, %41 : vector<16x256xf32>
    %44 = arith.mulf %7, %43 : vector<16x256xf32>
    %c0_19 = arith.constant 0 : index
    %c0_20 = arith.constant 0 : index
    %45 = vector.load %arg4[%c0_19, %c0_20] : memref<256x128xf32, #tpu.memory_space<vmem>>, vector<256x128xf32>
    %cst_21 = arith.constant dense<0.000000e+00> : vector<16x128xf32>
    %46 = tpu.matmul %44, %45, %cst_21 {dimension_numbers = #tpu.dot_dimension_numbers<[1], [0], [0], [1], [0, 0, 1, 1], [], []>} : vector<16x256xf32>, vector<256x128xf32>, vector<16x128xf32> -> vector<16x128xf32>
    %c0_22 = arith.constant 0 : index
    %c0_23 = arith.constant 0 : index
    %47 = vector.load %arg5[%c0_22, %c0_23] : memref<1x128xf32, #tpu.memory_space<vmem>>, vector<1x128xf32>
    %48 = vector.broadcast %47 : vector<1x128xf32> to vector<16x128xf32>
    %49 = arith.addf %46, %48 : vector<16x128xf32>
    %c0_24 = arith.constant 0 : index
    %c0_25 = arith.constant 0 : index
    %50 = vector.load %arg6[%c0_24, %c0_25] : memref<16x128xf32, #tpu.memory_space<vmem>>, vector<16x128xf32>
    tpu.vector_store %arg6[%c0_24, %c0_25], %49 {strides = array<i32>} : memref<16x128xf32, #tpu.memory_space<vmem>>, vector<16x128xf32>,
    return
  }
  func.func @transform_0(%arg0: i32) -> (i32, i32) {
    %c0_i32 = arith.constant 0 : i32
    %c0_i32_0 = arith.constant 0 : i32
    return %arg0, %c0_i32 : i32, i32
  }
  func.func @transform_1(%arg0: i32) -> (i32, i32) {
    %c0_i32 = arith.constant 0 : i32
    %c0_i32_0 = arith.constant 0 : i32
    %c0_i32_1 = arith.constant 0 : i32
    return %c0_i32, %c0_i32_0 : i32, i32
  }
  func.func @transform_2(%arg0: i32) -> (i32, i32) {
    %c0_i32 = arith.constant 0 : i32
    %c0_i32_0 = arith.constant 0 : i32
    %c0_i32_1 = arith.constant 0 : i32
    return %c0_i32, %c0_i32_0 : i32, i32
  }
  func.func @transform_3(%arg0: i32) -> (i32, i32) {
    %c0_i32 = arith.constant 0 : i32
    %c0_i32_0 = arith.constant 0 : i32
    %c0_i32_1 = arith.constant 0 : i32
    return %c0_i32, %c0_i32_0 : i32, i32
  }
  func.func @transform_4(%arg0: i32) -> (i32, i32) {
    %c0_i32 = arith.constant 0 : i32
    %c0_i32_0 = arith.constant 0 : i32
    %c0_i32_1 = arith.constant 0 : i32
    return %c0_i32, %c0_i32_0 : i32, i32
  }
  func.func @transform_5(%arg0: i32) -> (i32, i32) {
    %c0_i32 = arith.constant 0 : i32
    %c0_i32_0 = arith.constant 0 : i32
    return %arg0, %c0_i32 : i32, i32
  }
}

</mosaic_0001>

<bundles_post_ra>
// kernel: tpu_custom_call.1
= control target key start
LH: loop header
LB: loop body
LE: loop exit
PB: predicated region body
PF: predicated region fallthrough
CT: control target
= control target key end

     0   :  { %10 = vsyncpa [#allocation3], 0  ;;  %s673_s0 = inlined_call_operand.hbm [shape: f32[16,128], index: 0, kind: input, shape index: {}]   ;;  %s674_s1 = inlined_call_operand.hbm [shape: f32[128,256], index: 1, kind: input, shape index: {}]   ;;  %s675_s2 = inlined_call_operand.vmem [shape: f32[1,256], index: 2, kind: input, shape index: {}]   ;;  %s676_s3 = inlined_call_operand.hbm [shape: f32[256,128], index: 3, kind: input, shape index: {}]   ;;  %s677_s4 = inlined_call_operand.vmem [shape: f32[1,128], index: 4, kind: input, shape index: {}]   ;;  %s678_s5 = inlined_call_operand.hbm [shape: f32[16,128], index: 5, kind: output, shape index: {}]  }
   0x1   :  { %11 = vsyncpa [#allocation6], 0 }
   0x2   :  { %12 = vsyncpa [#allocation4], 0  ;;  %s573_s18 = smov [#allocation5]  }
   0x3   :  { %s30_s19 = sshll.u32 %s573_s18, 4  ;;  %s31_s19 = int_to_ptr.vmem [resolvable:$true] %s30_s19 }
   0x4   :  { %s495_s20 = scalar_lea.vmem %s31_s19, 4096  ;;  %p500_p1 = scmp.lt.s32.totalorder %s31_s19, %s31_s19 }
   0x5   :  { %p496_p0 = scmp.ne.s32.totalorder %s31_s19, %s495_s20  ;;  %p501_p2 = scmp.lt.s32.totalorder %s495_s20, %s495_s20 }
   0x7   :  { %p502_p3 = por %p501_p2, %p500_p1 }
   0x9   :  { %p503_p4 = pnand %p502_p3, %p496_p0 }
   0xb   :  { %506 = shalt.err (!%p503_p4)
}
   0xc   :  { %s574_s21 = smov 256   ;;  %s575_s22 = smov 16  }
   0xd   :  { %36 = dma.hbm_to_vmem [thread:$0]  %s674_s1, 4096, %s31_s19, [#allocation6], %s574_s21, %s574_s21, %s575_s22  }
   0xe   :  { %s576_s25 = smov [#allocation2]  }
   0xf   :  { %s18_s26 = sshll.u32 %s576_s25, 4  ;;  %s19_s26 = int_to_ptr.vmem [resolvable:$true] %s18_s26 }
  0x10   :  { %s515_s27 = scalar_lea.vmem %s19_s26, 256  ;;  %p520_p6 = scmp.lt.s32.totalorder %s19_s26, %s19_s26 }
  0x11   :  { %p516_p5 = scmp.ne.s32.totalorder %s19_s26, %s515_s27  ;;  %p521_p7 = scmp.lt.s32.totalorder %s515_s27, %s515_s27 }
  0x13   :  { %p522_p8 = por %p521_p7, %p520_p6 }
  0x15   :  { %p523_p9 = pnand %p522_p8, %p516_p5 }
  0x17   :  { %526 = shalt.err (!%p523_p9)
}
  0x18   :  { %s577_s28 = smov 128   ;;  %s578_s29 = smov 8  }
  0x19   :  { %24 = dma.hbm_to_vmem [thread:$0]  %s673_s0, 256, %s19_s26, [#allocation3], %s577_s28, %s577_s28, %s578_s29  }
  0x1a   :  { %s579_s1 = smov [#allocation7]  }
  0x1b   :  { %s44_s7 = sshll.u32 %s579_s1, 4  ;;  %s45_s7 = int_to_ptr.vmem [resolvable:$true] %s44_s7 }
  0x1c   :  { %s535_s8 = scalar_lea.vmem %s45_s7, 4096  ;;  %p540_p11 = scmp.lt.s32.totalorder %s45_s7, %s45_s7 }
  0x1d   :  { %p536_p10 = scmp.ne.s32.totalorder %s45_s7, %s535_s8  ;;  %p541_p12 = scmp.lt.s32.totalorder %s535_s8, %s535_s8 }
  0x1f   :  { %p542_p13 = por %p541_p12, %p540_p11 }
  0x21   :  { %p543_p0 = pnand %p542_p13, %p536_p10 }
  0x23   :  { %546 = shalt.err (!%p543_p0)
}
  0x24   :  { %50 = dma.hbm_to_vmem [thread:$0]  %s676_s3, 4096, %s45_s7, [#allocation6], %s577_s28, %s577_s28, %s578_s29  }
  0x25   :  { %567 = dma.done.wait [#allocation3], 256  }
  0x26   :  { %568 = vsyncadd [#allocation3], 4294967040 }
  0x27   :  { %569 = dma.done.wait [#allocation6], 8192  }
  0x28   :  { %570 = vsyncadd [#allocation6], 4294959104  ;;  %v580_v0 = vmov 0.0   ;;  %v95_v1 = vld [vmem:[#allocation5 + $0xf8] sm:$0xff]  ;;  %v94_v2 = vld [vmem:[#allocation5 + $0xf0] sm:$0xff]  ;;  %s581_s12 = smov [#allocation8]  }
  0x29   :  { %172 = vmatprep.mubr.f32.mxu0 %v580_v0  ;;  %v93_v3 = vld [vmem:[#allocation5 + $0xe8] sm:$0xff]  ;;  %108 = vmatprep.subr.mxu0 %v95_v1  ;;  %v92_v4 = vld [vmem:[#allocation5 + $0xe0] sm:$0xff]  ;;  %v91_v5 = vld [vmem:[#allocation5 + $0xd8] sm:$0xff]  ;;  %s410_s13 = sshll.u32 %s581_s12, 4  ;;  %s411_s13 = int_to_ptr.vmem [resolvable:$true] %s410_s13 }
  0x2a   :  { %109 = vmatpush1.msra.mxu0 %v94_v2  ;;  %v90_v6 = vld [vmem:[#allocation5 + $0xd0] sm:$0xff]  ;;  %v89_v7 = vld [vmem:[#allocation5 + $0xc8] sm:$0xff]  ;;  %v88_v8 = vld [vmem:[#allocation5 + $0xc0] sm:$0xff]  ;;  %s547_s14 = scalar_lea.vmem %s411_s13, 256  ;;  %p552_p2 = scmp.lt.s32.totalorder %s411_s13, %s411_s13 }
  0x2b   :  { %110 = vmatprep.subr.mxu0 %v93_v3  ;;  %v87_v9 = vld [vmem:[#allocation5 + $0xb8] sm:$0xff]  ;;  %v86_v10 = vld [vmem:[#allocation5 + $0xb0] sm:$0xff]  ;;  %v85_v11 = vld [vmem:[#allocation5 + $0xa8] sm:$0xff]  ;;  %v98_v3 = vlaneseq  ;;  %p548_p1 = scmp.ne.s32.totalorder %s411_s13, %s547_s14  ;;  %p553_p3 = scmp.lt.s32.totalorder %s547_s14, %s547_s14 }
  0x2c   :  { %111 = vmatpush1.msra.mxu0 %v92_v4  ;;  %v84_v12 = vld [vmem:[#allocation5 + $0xa0] sm:$0xff]  ;;  %v83_v13 = vld [vmem:[#allocation5 + $0x98] sm:$0xff]  ;;  %v82_v14 = vld [vmem:[#allocation5 + $0x90] sm:$0xff] }
  0x2d   :  { %112 = vmatprep.subr.mxu0 %v91_v5  ;;  %v81_v15 = vld [vmem:[#allocation5 + $0x88] sm:$0xff]  ;;  %v80_v16 = vld [vmem:[#allocation5 + $0x80] sm:$0xff]  ;;  %v79_v17 = vld [vmem:[#allocation5 + $0x78] sm:$0xff]  ;;  %v99_v4 = vshrl.u32 %v98_v3, 7  ;;  %p554_p4 = por %p553_p3, %p552_p2 }
  0x2e   :  { %113 = vmatpush1.msra.mxu0 %v90_v6  ;;  %v78_v18 = vld [vmem:[#allocation5 + $0x70] sm:$0xff]  ;;  %v77_v19 = vld [vmem:[#allocation5 + $0x68] sm:$0xff]  ;;  %v76_v20 = vld [vmem:[#allocation5 + $0x60] sm:$0xff] }
  0x2f   :  { %114 = vmatprep.subr.mxu0 %v89_v7  ;;  %v75_v21 = vld [vmem:[#allocation5 + $0x58] sm:$0xff]  ;;  %v74_v22 = vld [vmem:[#allocation5 + $0x50] sm:$0xff]  ;;  %v73_v23 = vld [vmem:[#allocation5 + $0x48] sm:$0xff]  ;;  %v100_v5 = vsub.s32 0, %v99_v4  ;;  %v104_v7 = vsub.s32 1, %v99_v4  ;;  %p555_p5 = pnand %p554_p4, %p548_p1 }
  0x30   :  { %115 = vmatpush1.msra.mxu0 %v88_v8  ;;  %v72_v24 = vld [vmem:[#allocation5 + $0x40] sm:$0xff]  ;;  %v71_v25 = vld [vmem:[#allocation5 + $0x38] sm:$0xff]  ;;  %v70_v26 = vld [vmem:[#allocation5 + $0x30] sm:$0xff] }
  0x31   :  { %116 = vmatprep.subr.mxu0 %v87_v9  ;;  %v69_v27 = vld [vmem:[#allocation5 + $0x28] sm:$0xff]  ;;  %v68_v28 = vld [vmem:[#allocation5 + $0x20] sm:$0xff]  ;;  %v67_v29 = vld [vmem:[#allocation5 + $0x18] sm:$0xff] }
  0x32   :  { %117 = vmatpush1.msra.mxu0 %v86_v10  ;;  %v66_v30 = vld [vmem:[#allocation5 + $0x10] sm:$0xff]  ;;  %v65_v31 = vld [vmem:[#allocation5 + $0x8] sm:$0xff]  ;;  %v64_v32 = vld [vmem:[#allocation5] sm:$0xff] }
  0x33   :  { %118 = vmatprep.subr.mxu0 %v85_v11  ;;  %v62_v33 = vld [vmem:[#allocation2] sm:$0xff]  ;;  %v63_v34 = vld [vmem:[#allocation2 + $0x8] sm:$0xff]  ;;  %v318_v39 = vld [vmem:[#allocation7 + $0xe8] sm:$0xff] }
  0x34   :  { %119 = vmatpush1.msra.mxu0 %v84_v12  ;;  %v320_v35 = vld [vmem:[#allocation7 + $0xf8] sm:$0xff]  ;;  %v319_v37 = vld [vmem:[#allocation7 + $0xf0] sm:$0xff]  ;;  %v302_v40 = vld [vmem:[#allocation7 + $0x68] sm:$0xff] }
  0x35   :  { %120 = vmatprep.subr.mxu0 %v83_v13  ;;  %v304_v36 = vld [vmem:[#allocation7 + $0x78] sm:$0xff]  ;;  %424 = vmatprep.subr.mxu1 %v320_v35  ;;  %v303_v38 = vld [vmem:[#allocation7 + $0x70] sm:$0xff]  ;;  %v317_v41 = vld [vmem:[#allocation7 + $0xe0] sm:$0xff] }
  0x36   :  { %121 = vmatpush1.msra.mxu0 %v82_v14  ;;  %425 = vmatpush3.msra.mxu1 %v304_v36  ;;  %v301_v42 = vld [vmem:[#allocation7 + $0x60] sm:$0xff]  ;;  %v316_v43 = vld [vmem:[#allocation7 + $0xd8] sm:$0xff]  ;;  %v315_v45 = vld [vmem:[#allocation7 + $0xd0] sm:$0xff] }
  0x37   :  { %122 = vmatprep.subr.mxu0 %v81_v15  ;;  %426 = vmatprep.subr.mxu1 %v319_v37  ;;  %v300_v44 = vld [vmem:[#allocation7 + $0x58] sm:$0xff]  ;;  %v299_v46 = vld [vmem:[#allocation7 + $0x50] sm:$0xff]  ;;  %v314_v47 = vld [vmem:[#allocation7 + $0xc8] sm:$0xff] }
  0x38   :  { %123 = vmatpush1.msra.mxu0 %v80_v16  ;;  %427 = vmatpush3.msra.mxu1 %v303_v38  ;;  %v298_v48 = vld [vmem:[#allocation7 + $0x48] sm:$0xff]  ;;  %v313_v49 = vld [vmem:[#allocation7 + $0xc0] sm:$0xff]  ;;  %v312_v51 = vld [vmem:[#allocation7 + $0xb8] sm:$0xff] }
  0x39   :  { %124 = vmatprep.subr.mxu0 %v79_v17  ;;  %428 = vmatprep.subr.mxu1 %v318_v39  ;;  %v297_v50 = vld [vmem:[#allocation7 + $0x40] sm:$0xff]  ;;  %v296_v52 = vld [vmem:[#allocation7 + $0x38] sm:$0xff]  ;;  %v311_v53 = vld [vmem:[#allocation7 + $0xb0] sm:$0xff] }
  0x3a   :  { %125 = vmatpush1.msra.mxu0 %v78_v18  ;;  %429 = vmatpush3.msra.mxu1 %v302_v40  ;;  %v295_v54 = vld [vmem:[#allocation7 + $0x30] sm:$0xff]  ;;  %v310_v55 = vld [vmem:[#allocation7 + $0xa8] sm:$0xff]  ;;  %v309_v57 = vld [vmem:[#allocation7 + $0xa0] sm:$0xff] }
  0x3b   :  { %126 = vmatprep.subr.mxu0 %v77_v19  ;;  %430 = vmatprep.subr.mxu1 %v317_v41  ;;  %v294_v56 = vld [vmem:[#allocation7 + $0x28] sm:$0xff]  ;;  %v293_v58 = vld [vmem:[#allocation7 + $0x20] sm:$0xff]  ;;  %v308_v59 = vld [vmem:[#allocation7 + $0x98] sm:$0xff] }
  0x3c   :  { %127 = vmatpush1.msra.mxu0 %v76_v20  ;;  %431 = vmatpush3.msra.mxu1 %v301_v42  ;;  %v292_v60 = vld [vmem:[#allocation7 + $0x18] sm:$0xff]  ;;  %v307_v61 = vld [vmem:[#allocation7 + $0x90] sm:$0xff]  ;;  %v306_v63 = vld [vmem:[#allocation7 + $0x88] sm:$0xff] }
  0x3d   :  { %128 = vmatprep.subr.mxu0 %v75_v21  ;;  %432 = vmatprep.subr.mxu1 %v316_v43  ;;  %v291_v62 = vld [vmem:[#allocation7 + $0x10] sm:$0xff]  ;;  %v305_v1 = vld [vmem:[#allocation7 + $0x80] sm:$0xff] }
  0x3e   :  { %129 = vmatpush1.msra.mxu0 %v74_v22  ;;  %433 = vmatpush3.msra.mxu1 %v300_v44  ;;  %v289_v2 = vld [vmem:[#allocation7] sm:$0xff]  ;;  %v96_v6 = vld [vmem:[%s675_s2] sm:$0x3] }
  0x3f   :  { %130 = vmatprep.subr.mxu0 %v73_v23  ;;  %434 = vmatprep.subr.mxu1 %v315_v45  ;;  %v101_v8 = vrot.slane %v96_v6, %v100_v5  ;;  %v105_v9 = vrot.slane %v96_v6, %v104_v7 }
  0x40   :  { %131 = vmatpush1.msra.mxu0 %v72_v24  ;;  %435 = vmatpush3.msra.mxu1 %v299_v46 }
  0x41   :  { %132 = vmatprep.subr.mxu0 %v71_v25  ;;  %436 = vmatprep.subr.mxu1 %v314_v47 }
  0x42   :  { %133 = vmatpush1.msra.mxu0 %v70_v26  ;;  %437 = vmatpush3.msra.mxu1 %v298_v48 }
  0x43   :  { %134 = vmatprep.subr.mxu0 %v69_v27  ;;  %438 = vmatprep.subr.mxu1 %v313_v49 }
  0x44   :  { %135 = vmatpush1.msra.mxu0 %v68_v28  ;;  %439 = vmatpush3.msra.mxu1 %v297_v50 }
  0x45   :  { %136 = vmatprep.subr.mxu0 %v67_v29  ;;  %440 = vmatprep.subr.mxu1 %v312_v51 }
  0x46   :  { %137 = vmatpush1.msra.mxu0 %v66_v30  ;;  %441 = vmatpush3.msra.mxu1 %v296_v52 }
  0x47   :  { %138 = vmatprep.subr.mxu0 %v65_v31  ;;  %442 = vmatprep.subr.mxu1 %v311_v53 }
  0x48   :  { %139 = vmatpush1.msra.mxu0 %v64_v32  ;;  %443 = vmatpush3.msra.mxu1 %v295_v54 }
  0x49   :  { %173 = vmatmul.mubr.f32.vlgmr.msra.gmra.mxu0 %v62_v33  ;;  %444 = vmatprep.subr.mxu1 %v310_v55 }
  0x4a   :  { %178 = vmatprep.mubr.f32.mxu0 %v580_v0  ;;  %445 = vmatpush3.msra.mxu1 %v294_v56  ;;  %v290_v0 = vld [vmem:[#allocation7 + $0x8] sm:$0xff] }
  0x4b   :  { %446 = vmatprep.subr.mxu1 %v309_v57 }
  0x4c   :  { %447 = vmatpush3.msra.mxu1 %v293_v58 }
  0x4d   :  { %179 = vmatmul.mubr.f32.gmra.mxu0 %v63_v34  ;;  %448 = vmatprep.subr.mxu1 %v308_v59 }
  0x4e   :  { %449 = vmatpush3.msra.mxu1 %v292_v60 }
  0x4f   :  { %450 = vmatprep.subr.mxu1 %v307_v61 }
  0x50   :  { %451 = vmatpush3.msra.mxu1 %v291_v62 }
  0x51   :  { %452 = vmatprep.subr.mxu1 %v306_v63 }
  0x52   :  { %453 = vmatpush3.msra.mxu1 %v290_v0 }
  0x53   :  { %454 = vmatprep.subr.mxu1 %v305_v1 }
  0x54   :  { %455 = vmatpush3.msra.mxu1 %v289_v2 }
 0x109   :  { %v174_v10 = vpop.f32.mrf.mxu0 }
 0x10a   :  { %v632_v11 = vadd.f32 %v174_v10, %v101_v8 }
 0x10b   :  { %v176_v12 = vpop.f32.mrf.mxu0 }
 0x10c   :  { %v635_v13 = vmul.f32 0.70710677, %v632_v11  ;;  %v637_v14 = vadd.f32 %v176_v12, %v105_v9 }
 0x10d   :  { %v180_v15 = vpop.f32.mrf.mxu0 }
 0x10e   :  { %v193_v16 = vand.u32 2147483647, %v635_v13  ;;  %v641_v17 = vmul.f32 0.70710677, %v637_v14  ;;  %v643_v18 = vadd.f32 %v180_v15, %v101_v8  ;;  %vm269_vm0 = vcmp.lt.f32.partialorder %v635_v13, 0.0 }
 0x10f   :  { %v182_v19 = vpop.f32.mrf.mxu0  ;;  %v185_v13 = vmul.f32 0.5, %v632_v11 }
 0x110   :  { %v197_v20 = vmul.f32 0.3275911, %v193_v16  ;;  %v194_v21 = vand.u32 2147483647, %v641_v17  ;;  %v647_v22 = vmul.f32 0.70710677, %v643_v18  ;;  %v649_v23 = vadd.f32 %v182_v19, %v105_v9 }
 0x111   :  { %v245_v34 = vsub.f32 0.0, %v193_v16  ;;  %vm270_vm1 = vcmp.lt.f32.partialorder %v641_v17, 0.0 }
 0x112   :  { %v201_v24 = vadd.f32 1.0, %v197_v20  ;;  %v198_v25 = vmul.f32 0.3275911, %v194_v21  ;;  %v195_v26 = vand.u32 2147483647, %v647_v22  ;;  %v246_v35 = vsub.f32 0.0, %v194_v21 }
 0x113   :  { %v653_v27 = vmul.f32 0.70710677, %v649_v23  ;;  %v249_v36 = vmul.f32 %v245_v34, %v193_v16  ;;  %vm271_vm2 = vcmp.lt.f32.partialorder %v647_v22, 0.0  ;;  %v187_v22 = vmul.f32 0.5, %v643_v18 }
 0x114   :  { %471 = vrcp.f32 %v201_v24  ;;  %v202_v28 = vadd.f32 1.0, %v198_v25  ;;  %v199_v29 = vmul.f32 0.3275911, %v195_v26  ;;  %v247_v37 = vsub.f32 0.0, %v195_v26 }
 0x115   :  { %v196_v30 = vand.u32 2147483647, %v653_v27  ;;  %v250_v39 = vmul.f32 %v246_v35, %v194_v21  ;;  %v253_v40 = vmul.f32 1.442695, %v249_v36  ;;  %vm272_vm3 = vcmp.lt.f32.partialorder %v653_v27, 0.0 }
 0x116   :  { %473 = vrcp.f32 %v202_v28  ;;  %v203_v31 = vadd.f32 1.0, %v199_v29  ;;  %v251_v43 = vmul.f32 %v247_v37, %v195_v26 }
 0x117   :  { %v200_v32 = vmul.f32 0.3275911, %v196_v30  ;;  %v248_v41 = vsub.f32 0.0, %v196_v30  ;;  %v255_v46 = vmul.f32 1.442695, %v250_v39 }
 0x118   :  { %475 = vrcp.f32 %v203_v31  ;;  %v257_v51 = vmul.f32 1.442695, %v251_v43 }
 0x119   :  { %v204_v33 = vadd.f32 1.0, %v200_v32  ;;  %v252_v49 = vmul.f32 %v248_v41, %v196_v30 }
 0x11b   :  { %477 = vrcp.f32 %v204_v33  ;;  %v259_v58 = vmul.f32 1.442695, %v252_v49 }
 0x11c   :  { %479 = vpow2.f32 %v253_v40 }
 0x11d   :  { %481 = vpow2.f32 %v255_v46 }
 0x11e   :  { %483 = vpow2.f32 %v257_v51 }
 0x11f   :  { %485 = vpow2.f32 %v259_v58  ;;  %v423_v58 = vld [vmem:[%s677_s4] ss:$0 sm:$0xff] }
 0x121   :  { %v472_v38 = vpop.eup %471 }
 0x122   :  { %v209_v42 = vmul.f32 1.0614054, %v472_v38 }
 0x123   :  { %v474_v44 = vpop.eup %473 }
 0x124   :  { %v213_v45 = vadd.f32 -1.4531521, %v209_v42  ;;  %v210_v47 = vmul.f32 1.0614054, %v474_v44 }
 0x125   :  { %v476_v48 = vpop.eup %475 }
 0x126   :  { %v217_v50 = vmul.f32 %v472_v38, %v213_v45  ;;  %v214_v52 = vadd.f32 -1.4531521, %v210_v47  ;;  %v211_v53 = vmul.f32 1.0614054, %v476_v48  ;;  %v186_v47 = vmul.f32 0.5, %v637_v14 }
 0x128   :  { %v221_v54 = vadd.f32 1.4214138, %v217_v50  ;;  %v478_v55 = vpop.eup %477  ;;  %v218_v56 = vmul.f32 %v474_v44, %v214_v52  ;;  %v215_v57 = vadd.f32 -1.4531521, %v211_v53 }
 0x129   :  { %v212_v60 = vmul.f32 1.0614054, %v478_v55  ;;  %v480_v16 = vpop.eup %479 }
 0x12a   :  { %v225_v59 = vmul.f32 %v472_v38, %v221_v54  ;;  %v222_v61 = vadd.f32 1.4214138, %v218_v56  ;;  %v219_v62 = vmul.f32 %v476_v48, %v215_v57  ;;  %v482_v28 = vpop.eup %481 }
 0x12b   :  { %v216_v0 = vadd.f32 -1.4531521, %v212_v60  ;;  %v484_v33 = vpop.eup %483 }
 0x12c   :  { %v229_v63 = vadd.f32 -0.28449672, %v225_v59  ;;  %v226_v1 = vmul.f32 %v474_v44, %v222_v61  ;;  %v223_v2 = vadd.f32 1.4214138, %v219_v62  ;;  %v486_v40 = vpop.eup %485 }
 0x12d   :  { %v220_v4 = vmul.f32 %v478_v55, %v216_v0 }
 0x12e   :  { %v233_v3 = vmul.f32 %v472_v38, %v229_v63  ;;  %v230_v5 = vadd.f32 -0.28449672, %v226_v1  ;;  %v227_v6 = vmul.f32 %v476_v48, %v223_v2 }
 0x12f   :  { %v224_v8 = vadd.f32 1.4214138, %v220_v4 }
 0x130   :  { %v237_v7 = vadd.f32 0.2548296, %v233_v3  ;;  %v234_v9 = vmul.f32 %v474_v44, %v230_v5  ;;  %v231_v10 = vadd.f32 -0.28449672, %v227_v6 }
 0x131   :  { %v228_v15 = vmul.f32 %v478_v55, %v224_v8 }
 0x132   :  { %v241_v12 = vmul.f32 %v472_v38, %v237_v7  ;;  %v238_v19 = vadd.f32 0.2548296, %v234_v9  ;;  %v235_v20 = vmul.f32 %v476_v48, %v231_v10 }
 0x133   :  { %v232_v24 = vadd.f32 -0.28449672, %v228_v15 }
 0x134   :  { %v261_v21 = vmul.f32 %v480_v16, %v241_v12  ;;  %v242_v25 = vmul.f32 %v474_v44, %v238_v19  ;;  %v239_v26 = vadd.f32 0.2548296, %v235_v20 }
 0x135   :  { %v236_v30 = vmul.f32 %v478_v55, %v232_v24 }
 0x136   :  { %v265_v29 = vsub.f32 1.0, %v261_v21  ;;  %v262_v31 = vmul.f32 %v482_v28, %v242_v25  ;;  %v243_v32 = vmul.f32 %v476_v48, %v239_v26 }
 0x137   :  { %v240_v35 = vadd.f32 0.2548296, %v236_v30 }
 0x138   :  { %v273_v34 = vsub.f32 0.0, %v265_v29  ;;  %v266_v36 = vsub.f32 1.0, %v262_v31  ;;  %v263_v37 = vmul.f32 %v484_v33, %v243_v32 }
 0x139   :  { %v244_v39 = vmul.f32 %v478_v55, %v240_v35  ;;  %v188_v55 = vmul.f32 0.5, %v649_v23 }
 0x13a   :  { %v277_v38 = vsel %vm269_vm0, %v273_v34, %v265_v29  ;;  %v274_v41 = vsub.f32 0.0, %v266_v36  ;;  %v267_v42 = vsub.f32 1.0, %v263_v37 }
 0x13b   :  { %v264_v43 = vmul.f32 %v486_v40, %v244_v39  ;;  %v281_v45 = vadd.f32 1.0, %v277_v38 }
 0x13c   :  { %v278_v44 = vsel %vm270_vm1, %v274_v41, %v266_v36  ;;  %v275_v46 = vsub.f32 0.0, %v267_v42 }
 0x13d   :  { %v282_v48 = vadd.f32 1.0, %v278_v44  ;;  %v268_v49 = vsub.f32 1.0, %v264_v43  ;;  %v285_v53 = vmul.f32 %v281_v45, %v185_v13 }
 0x13e   :  { %v279_v50 = vsel %vm271_vm2, %v275_v46, %v267_v42 }
 0x13f   :  { %v286_v51 = vmul.f32 %v282_v48, %v186_v47  ;;  %v276_v52 = vsub.f32 0.0, %v268_v49  ;;  %v283_v54 = vadd.f32 1.0, %v279_v50 }
 0x141   :  { %392 = vmatprep.mubr.f32.mxu1 %v286_v51  ;;  %v280_v17 = vsel %vm272_vm3, %v276_v52, %v268_v49  ;;  %v287_v57 = vmul.f32 %v283_v54, %v187_v22 }
 0x142   :  { %393 = vmatmul.mubr.f32.vlgmr.msra.gmra.mxu1 %v285_v53  ;;  %v284_v56 = vadd.f32 1.0, %v280_v17 }
 0x144   :  { %v288_v14 = vmul.f32 %v284_v56, %v188_v55 }
 0x146   :  { %397 = vmatprep.mubr.f32.mxu1 %v288_v14 }
 0x147   :  { %398 = vmatmul.mubr.f32.gmra.mxu1 %v287_v57 }
 0x202   :  { %v456_v11 = vpop.f32.mrf.mxu1 }
 0x204   :  { %v457_v27 = vpop.f32.mrf.mxu1 }
 0x205   :  { %v458_v59 = vadd.f32 %v457_v27, %v456_v11 }
 0x207   :  { %v395_v60 = vadd.f32 %v458_v59, %v423_v58  ;;  %v459_v61 = vpop.f32.mrf.mxu1 }
 0x209   :  { %403 = vst [vmem:[#allocation8] sm:$0xff] %v395_v60  ;;  %v460_v62 = vpop.f32.mrf.mxu1 }
 0x20a   :  { %v461_v23 = vadd.f32 %v460_v62, %v459_v61 }
 0x20c   :  { %v400_v63 = vadd.f32 %v461_v23, %v423_v58 }
 0x20e   :  { %404 = vst [vmem:[#allocation8 + $0x8] sm:$0xff] %v400_v63 }
 0x20f   :  { %558 = shalt.err (!%p555_p5)
}
 0x210   :  { %416 = dma.vmem_to_hbm [thread:$0]  %s411_s13, 256, %s678_s5, [#allocation4], %s577_s28, %s577_s28, %s578_s29  }
 0x211   :  { %571 = dma.done.wait [#allocation4], 256  }
 0x212   :  { %572 = vsyncadd [#allocation4], 4294967040 }
 0x213   :  { %420 = vsyncpa [#allocation3], 1 }
 0x214   :  { %421 = vsyncpa [#allocation6], 1 }
 0x215   :  { %422 = vsyncpa [#allocation4], 1 }

// kernel: tpu_custom_call.1
= control target key start
LH: loop header
LB: loop body
LE: loop exit
PB: predicated region body
PF: predicated region fallthrough
CT: control target
= control target key end

     0   :  { %10 = vsyncpa [#allocation3], 0  ;;  %s673_s0 = inlined_call_operand.hbm [shape: f32[16,128], index: 0, kind: input, shape index: {}]   ;;  %s674_s1 = inlined_call_operand.hbm [shape: f32[128,256], index: 1, kind: input, shape index: {}]   ;;  %s675_s2 = inlined_call_operand.vmem [shape: f32[1,256], index: 2, kind: input, shape index: {}]   ;;  %s676_s3 = inlined_call_operand.hbm [shape: f32[256,128], index: 3, kind: input, shape index: {}]   ;;  %s677_s4 = inlined_call_operand.vmem [shape: f32[1,128], index: 4, kind: input, shape index: {}]   ;;  %s678_s5 = inlined_call_operand.hbm [shape: f32[16,128], index: 5, kind: output, shape index: {}]  }
   0x1   :  { %11 = vsyncpa [#allocation6], 0 }
   0x2   :  { %12 = vsyncpa [#allocation4], 0  ;;  %s573_s18 = smov [#allocation5]  }
   0x3   :  { %s30_s19 = sshll.u32 %s573_s18, 4  ;;  %s31_s19 = int_to_ptr.vmem [resolvable:$true] %s30_s19 }
   0x4   :  { %s495_s20 = scalar_lea.vmem %s31_s19, 4096  ;;  %p500_p1 = scmp.lt.s32.totalorder %s31_s19, %s31_s19 }
   0x5   :  { %p496_p0 = scmp.ne.s32.totalorder %s31_s19, %s495_s20  ;;  %p501_p2 = scmp.lt.s32.totalorder %s495_s20, %s495_s20 }
   0x7   :  { %p502_p3 = por %p501_p2, %p500_p1 }
   0x9   :  { %p503_p4 = pnand %p502_p3, %p496_p0 }
   0xb   :  { %506 = shalt.err (!%p503_p4)
}
   0xc   :  { %s574_s21 = smov 256   ;;  %s575_s22 = smov 16  }
   0xd   :  { %36 = dma.hbm_to_vmem [thread:$0]  %s674_s1, 4096, %s31_s19, [#allocation6], %s574_s21, %s574_s21, %s575_s22  }
   0xe   :  { %s576_s25 = smov [#allocation2]  }
   0xf   :  { %s18_s26 = sshll.u32 %s576_s25, 4  ;;  %s19_s26 = int_to_ptr.vmem [resolvable:$true] %s18_s26 }
  0x10   :  { %s515_s27 = scalar_lea.vmem %s19_s26, 256  ;;  %p520_p6 = scmp.lt.s32.totalorder %s19_s26, %s19_s26 }
  0x11   :  { %p516_p5 = scmp.ne.s32.totalorder %s19_s26, %s515_s27  ;;  %p521_p7 = scmp.lt.s32.totalorder %s515_s27, %s515_s27 }
  0x13   :  { %p522_p8 = por %p521_p7, %p520_p6 }
  0x15   :  { %p523_p9 = pnand %p522_p8, %p516_p5 }
  0x17   :  { %526 = shalt.err (!%p523_p9)
}
  0x18   :  { %s577_s28 = smov 128   ;;  %s578_s29 = smov 8  }
  0x19   :  { %24 = dma.hbm_to_vmem [thread:$0]  %s673_s0, 256, %s19_s26, [#allocation3], %s577_s28, %s577_s28, %s578_s29  }
  0x1a   :  { %s579_s1 = smov [#allocation7]  }
  0x1b   :  { %s44_s7 = sshll.u32 %s579_s1, 4  ;;  %s45_s7 = int_to_ptr.vmem [resolvable:$true] %s44_s7 }
  0x1c   :  { %s535_s8 = scalar_lea.vmem %s45_s7, 4096  ;;  %p540_p11 = scmp.lt.s32.totalorder %s45_s7, %s45_s7 }
  0x1d   :  { %p536_p10 = scmp.ne.s32.totalorder %s45_s7, %s535_s8  ;;  %p541_p12 = scmp.lt.s32.totalorder %s535_s8, %s535_s8 }
  0x1f   :  { %p542_p13 = por %p541_p12, %p540_p11 }
  0x21   :  { %p543_p0 = pnand %p542_p13, %p536_p10 }
  0x23   :  { %546 = shalt.err (!%p543_p0)
}
  0x24   :  { %50 = dma.hbm_to_vmem [thread:$0]  %s676_s3, 4096, %s45_s7, [#allocation6], %s577_s28, %s577_s28, %s578_s29  }
  0x25   :  { %567 = dma.done.wait [#allocation3], 256  }
  0x26   :  { %568 = vsyncadd [#allocation3], 4294967040 }
  0x27   :  { %569 = dma.done.wait [#allocation6], 8192  }
  0x28   :  { %570 = vsyncadd [#allocation6], 4294959104  ;;  %v580_v0 = vmov 0.0   ;;  %v95_v1 = vld [vmem:[#allocation5 + $0xf8] sm:$0xff]  ;;  %v94_v2 = vld [vmem:[#allocation5 + $0xf0] sm:$0xff]  ;;  %s581_s12 = smov [#allocation8]  }
  0x29   :  { %172 = vmatprep.mubr.f32.mxu0 %v580_v0  ;;  %v93_v3 = vld [vmem:[#allocation5 + $0xe8] sm:$0xff]  ;;  %108 = vmatprep.subr.mxu0 %v95_v1  ;;  %v92_v4 = vld [vmem:[#allocation5 + $0xe0] sm:$0xff]  ;;  %v91_v5 = vld [vmem:[#allocation5 + $0xd8] sm:$0xff]  ;;  %s410_s13 = sshll.u32 %s581_s12, 4  ;;  %s411_s13 = int_to_ptr.vmem [resolvable:$true] %s410_s13 }
  0x2a   :  { %109 = vmatpush1.msra.mxu0 %v94_v2  ;;  %v90_v6 = vld [vmem:[#allocation5 + $0xd0] sm:$0xff]  ;;  %v89_v7 = vld [vmem:[#allocation5 + $0xc8] sm:$0xff]  ;;  %v88_v8 = vld [vmem:[#allocation5 + $0xc0] sm:$0xff]  ;;  %s547_s14 = scalar_lea.vmem %s411_s13, 256  ;;  %p552_p2 = scmp.lt.s32.totalorder %s411_s13, %s411_s13 }
  0x2b   :  { %110 = vmatprep.subr.mxu0 %v93_v3  ;;  %v87_v9 = vld [vmem:[#allocation5 + $0xb8] sm:$0xff]  ;;  %v86_v10 = vld [vmem:[#allocation5 + $0xb0] sm:$0xff]  ;;  %v85_v11 = vld [vmem:[#allocation5 + $0xa8] sm:$0xff]  ;;  %v98_v3 = vlaneseq  ;;  %p548_p1 = scmp.ne.s32.totalorder %s411_s13, %s547_s14  ;;  %p553_p3 = scmp.lt.s32.totalorder %s547_s14, %s547_s14 }
  0x2c   :  { %111 = vmatpush1.msra.mxu0 %v92_v4  ;;  %v84_v12 = vld [vmem:[#allocation5 + $0xa0] sm:$0xff]  ;;  %v83_v13 = vld [vmem:[#allocation5 + $0x98] sm:$0xff]  ;;  %v82_v14 = vld [vmem:[#allocation5 + $0x90] sm:$0xff] }
  0x2d   :  { %112 = vmatprep.subr.mxu0 %v91_v5  ;;  %v81_v15 = vld [vmem:[#allocation5 + $0x88] sm:$0xff]  ;;  %v80_v16 = vld [vmem:[#allocation5 + $0x80] sm:$0xff]  ;;  %v79_v17 = vld [vmem:[#allocation5 + $0x78] sm:$0xff]  ;;  %v99_v4 = vshrl.u32 %v98_v3, 7  ;;  %p554_p4 = por %p553_p3, %p552_p2 }
  0x2e   :  { %113 = vmatpush1.msra.mxu0 %v90_v6  ;;  %v78_v18 = vld [vmem:[#allocation5 + $0x70] sm:$0xff]  ;;  %v77_v19 = vld [vmem:[#allocation5 + $0x68] sm:$0xff]  ;;  %v76_v20 = vld [vmem:[#allocation5 + $0x60] sm:$0xff] }
  0x2f   :  { %114 = vmatprep.subr.mxu0 %v89_v7  ;;  %v75_v21 = vld [vmem:[#allocation5 + $0x58] sm:$0xff]  ;;  %v74_v22 = vld [vmem:[#allocation5 + $0x50] sm:$0xff]  ;;  %v73_v23 = vld [vmem:[#allocation5 + $0x48] sm:$0xff]  ;;  %v100_v5 = vsub.s32 0, %v99_v4  ;;  %v104_v7 = vsub.s32 1, %v99_v4  ;;  %p555_p5 = pnand %p554_p4, %p548_p1 }
  0x30   :  { %115 = vmatpush1.msra.mxu0 %v88_v8  ;;  %v72_v24 = vld [vmem:[#allocation5 + $0x40] sm:$0xff]  ;;  %v71_v25 = vld [vmem:[#allocation5 + $0x38] sm:$0xff]  ;;  %v70_v26 = vld [vmem:[#allocation5 + $0x30] sm:$0xff] }
  0x31   :  { %116 = vmatprep.subr.mxu0 %v87_v9  ;;  %v69_v27 = vld [vmem:[#allocation5 + $0x28] sm:$0xff]  ;;  %v68_v28 = vld [vmem:[#allocation5 + $0x20] sm:$0xff]  ;;  %v67_v29 = vld [vmem:[#allocation5 + $0x18] sm:$0xff] }
  0x32   :  { %117 = vmatpush1.msra.mxu0 %v86_v10  ;;  %v66_v30 = vld [vmem:[#allocation5 + $0x10] sm:$0xff]  ;;  %v65_v31 = vld [vmem:[#allocation5 + $0x8] sm:$0xff]  ;;  %v64_v32 = vld [vmem:[#allocation5] sm:$0xff] }
  0x33   :  { %118 = vmatprep.subr.mxu0 %v85_v11  ;;  %v62_v33 = vld [vmem:[#allocation2] sm:$0xff]  ;;  %v63_v34 = vld [vmem:[#allocation2 + $0x8] sm:$0xff]  ;;  %v318_v39 = vld [vmem:[#allocation7 + $0xe8] sm:$0xff] }
  0x34   :  { %119 = vmatpush1.msra.mxu0 %v84_v12  ;;  %v320_v35 = vld [vmem:[#allocation7 + $0xf8] sm:$0xff]  ;;  %v319_v37 = vld [vmem:[#allocation7 + $0xf0] sm:$0xff]  ;;  %v302_v40 = vld [vmem:[#allocation7 + $0x68] sm:$0xff] }
  0x35   :  { %120 = vmatprep.subr.mxu0 %v83_v13  ;;  %v304_v36 = vld [vmem:[#allocation7 + $0x78] sm:$0xff]  ;;  %424 = vmatprep.subr.mxu1 %v320_v35  ;;  %v303_v38 = vld [vmem:[#allocation7 + $0x70] sm:$0xff]  ;;  %v317_v41 = vld [vmem:[#allocation7 + $0xe0] sm:$0xff] }
  0x36   :  { %121 = vmatpush1.msra.mxu0 %v82_v14  ;;  %425 = vmatpush3.msra.mxu1 %v304_v36  ;;  %v301_v42 = vld [vmem:[#allocation7 + $0x60] sm:$0xff]  ;;  %v316_v43 = vld [vmem:[#allocation7 + $0xd8] sm:$0xff]  ;;  %v315_v45 = vld [vmem:[#allocation7 + $0xd0] sm:$0xff] }
  0x37   :  { %122 = vmatprep.subr.mxu0 %v81_v15  ;;  %426 = vmatprep.subr.mxu1 %v319_v37  ;;  %v300_v44 = vld [vmem:[#allocation7 + $0x58] sm:$0xff]  ;;  %v299_v46 = vld [vmem:[#allocation7 + $0x50] sm:$0xff]  ;;  %v314_v47 = vld [vmem:[#allocation7 + $0xc8] sm:$0xff] }
  0x38   :  { %123 = vmatpush1.msra.mxu0 %v80_v16  ;;  %427 = vmatpush3.msra.mxu1 %v303_v38  ;;  %v298_v48 = vld [vmem:[#allocation7 + $0x48] sm:$0xff]  ;;  %v313_v49 = vld [vmem:[#allocation7 + $0xc0] sm:$0xff]  ;;  %v312_v51 = vld [vmem:[#allocation7 + $0xb8] sm:$0xff] }
  0x39   :  { %124 = vmatprep.subr.mxu0 %v79_v17  ;;  %428 = vmatprep.subr.mxu1 %v318_v39  ;;  %v297_v50 = vld [vmem:[#allocation7 + $0x40] sm:$0xff]  ;;  %v296_v52 = vld [vmem:[#allocation7 + $0x38] sm:$0xff]  ;;  %v311_v53 = vld [vmem:[#allocation7 + $0xb0] sm:$0xff] }
  0x3a   :  { %125 = vmatpush1.msra.mxu0 %v78_v18  ;;  %429 = vmatpush3.msra.mxu1 %v302_v40  ;;  %v295_v54 = vld [vmem:[#allocation7 + $0x30] sm:$0xff]  ;;  %v310_v55 = vld [vmem:[#allocation7 + $0xa8] sm:$0xff]  ;;  %v309_v57 = vld [vmem:[#allocation7 + $0xa0] sm:$0xff] }
  0x3b   :  { %126 = vmatprep.subr.mxu0 %v77_v19  ;;  %430 = vmatprep.subr.mxu1 %v317_v41  ;;  %v294_v56 = vld [vmem:[#allocation7 + $0x28] sm:$0xff]  ;;  %v293_v58 = vld [vmem:[#allocation7 + $0x20] sm:$0xff]  ;;  %v308_v59 = vld [vmem:[#allocation7 + $0x98] sm:$0xff] }
  0x3c   :  { %127 = vmatpush1.msra.mxu0 %v76_v20  ;;  %431 = vmatpush3.msra.mxu1 %v301_v42  ;;  %v292_v60 = vld [vmem:[#allocation7 + $0x18] sm:$0xff]  ;;  %v307_v61 = vld [vmem:[#allocation7 + $0x90] sm:$0xff]  ;;  %v306_v63 = vld [vmem:[#allocation7 + $0x88] sm:$0xff] }
  0x3d   :  { %128 = vmatprep.subr.mxu0 %v75_v21  ;;  %432 = vmatprep.subr.mxu1 %v316_v43  ;;  %v291_v62 = vld [vmem:[#allocation7 + $0x10] sm:$0xff]  ;;  %v305_v1 = vld [vmem:[#allocation7 + $0x80] sm:$0xff] }
  0x3e   :  { %129 = vmatpush1.msra.mxu0 %v74_v22  ;;  %433 = vmatpush3.msra.mxu1 %v300_v44  ;;  %v289_v2 = vld [vmem:[#allocation7] sm:$0xff]  ;;  %v96_v6 = vld [vmem:[%s675_s2] sm:$0x3] }
  0x3f   :  { %130 = vmatprep.subr.mxu0 %v73_v23  ;;  %434 = vmatprep.subr.mxu1 %v315_v45  ;;  %v101_v8 = vrot.slane %v96_v6, %v100_v5  ;;  %v105_v9 = vrot.slane %v96_v6, %v104_v7 }
  0x40   :  { %131 = vmatpush1.msra.mxu0 %v72_v24  ;;  %435 = vmatpush3.msra.mxu1 %v299_v46 }
  0x41   :  { %132 = vmatprep.subr.mxu0 %v71_v25  ;;  %436 = vmatprep.subr.mxu1 %v314_v47 }
  0x42   :  { %133 = vmatpush1.msra.mxu0 %v70_v26  ;;  %437 = vmatpush3.msra.mxu1 %v298_v48 }
  0x43   :  { %134 = vmatprep.subr.mxu0 %v69_v27  ;;  %438 = vmatprep.subr.mxu1 %v313_v49 }
  0x44   :  { %135 = vmatpush1.msra.mxu0 %v68_v28  ;;  %439 = vmatpush3.msra.mxu1 %v297_v50 }
  0x45   :  { %136 = vmatprep.subr.mxu0 %v67_v29  ;;  %440 = vmatprep.subr.mxu1 %v312_v51 }
  0x46   :  { %137 = vmatpush1.msra.mxu0 %v66_v30  ;;  %441 = vmatpush3.msra.mxu1 %v296_v52 }
  0x47   :  { %138 = vmatprep.subr.mxu0 %v65_v31  ;;  %442 = vmatprep.subr.mxu1 %v311_v53 }
  0x48   :  { %139 = vmatpush1.msra.mxu0 %v64_v32  ;;  %443 = vmatpush3.msra.mxu1 %v295_v54 }
  0x49   :  { %173 = vmatmul.mubr.f32.vlgmr.msra.gmra.mxu0 %v62_v33  ;;  %444 = vmatprep.subr.mxu1 %v310_v55 }
  0x4a   :  { %178 = vmatprep.mubr.f32.mxu0 %v580_v0  ;;  %445 = vmatpush3.msra.mxu1 %v294_v56  ;;  %v290_v0 = vld [vmem:[#allocation7 + $0x8] sm:$0xff] }
  0x4b   :  { %446 = vmatprep.subr.mxu1 %v309_v57 }
  0x4c   :  { %447 = vmatpush3.msra.mxu1 %v293_v58 }
  0x4d   :  { %179 = vmatmul.mubr.f32.gmra.mxu0 %v63_v34  ;;  %448 = vmatprep.subr.mxu1 %v308_v59 }
  0x4e   :  { %449 = vmatpush3.msra.mxu1 %v292_v60 }
  0x4f   :  { %450 = vmatprep.subr.mxu1 %v307_v61 }
  0x50   :  { %451 = vmatpush3.msra.mxu1 %v291_v62 }
  0x51   :  { %452 = vmatprep.subr.mxu1 %v306_v63 }
  0x52   :  { %453 = vmatpush3.msra.mxu1 %v290_v0 }
  0x53   :  { %454 = vmatprep.subr.mxu1 %v305_v1 }
  0x54   :  { %455 = vmatpush3.msra.mxu1 %v289_v2 }
 0x109   :  { %v174_v10 = vpop.f32.mrf.mxu0 }
 0x10a   :  { %v632_v11 = vadd.f32 %v174_v10, %v101_v8 }
 0x10b   :  { %v176_v12 = vpop.f32.mrf.mxu0 }
 0x10c   :  { %v635_v13 = vmul.f32 0.70710677, %v632_v11  ;;  %v637_v14 = vadd.f32 %v176_v12, %v105_v9 }
 0x10d   :  { %v180_v15 = vpop.f32.mrf.mxu0 }
 0x10e   :  { %v193_v16 = vand.u32 2147483647, %v635_v13  ;;  %v641_v17 = vmul.f32 0.70710677, %v637_v14  ;;  %v643_v18 = vadd.f32 %v180_v15, %v101_v8  ;;  %vm269_vm0 = vcmp.lt.f32.partialorder %v635_v13, 0.0 }
 0x10f   :  { %v182_v19 = vpop.f32.mrf.mxu0  ;;  %v185_v13 = vmul.f32 0.5, %v632_v11 }
 0x110   :  { %v197_v20 = vmul.f32 0.3275911, %v193_v16  ;;  %v194_v21 = vand.u32 2147483647, %v641_v17  ;;  %v647_v22 = vmul.f32 0.70710677, %v643_v18  ;;  %v649_v23 = vadd.f32 %v182_v19, %v105_v9 }
 0x111   :  { %v245_v34 = vsub.f32 0.0, %v193_v16  ;;  %vm270_vm1 = vcmp.lt.f32.partialorder %v641_v17, 0.0 }
 0x112   :  { %v201_v24 = vadd.f32 1.0, %v197_v20  ;;  %v198_v25 = vmul.f32 0.3275911, %v194_v21  ;;  %v195_v26 = vand.u32 2147483647, %v647_v22  ;;  %v246_v35 = vsub.f32 0.0, %v194_v21 }
 0x113   :  { %v653_v27 = vmul.f32 0.70710677, %v649_v23  ;;  %v249_v36 = vmul.f32 %v245_v34, %v193_v16  ;;  %vm271_vm2 = vcmp.lt.f32.partialorder %v647_v22, 0.0  ;;  %v187_v22 = vmul.f32 0.5, %v643_v18 }
 0x114   :  { %471 = vrcp.f32 %v201_v24  ;;  %v202_v28 = vadd.f32 1.0, %v198_v25  ;;  %v199_v29 = vmul.f32 0.3275911, %v195_v26  ;;  %v247_v37 = vsub.f32 0.0, %v195_v26 }
 0x115   :  { %v196_v30 = vand.u32 2147483647, %v653_v27  ;;  %v250_v39 = vmul.f32 %v246_v35, %v194_v21  ;;  %v253_v40 = vmul.f32 1.442695, %v249_v36  ;;  %vm272_vm3 = vcmp.lt.f32.partialorder %v653_v27, 0.0 }
 0x116   :  { %473 = vrcp.f32 %v202_v28  ;;  %v203_v31 = vadd.f32 1.0, %v199_v29  ;;  %v251_v43 = vmul.f32 %v247_v37, %v195_v26 }
 0x117   :  { %v200_v32 = vmul.f32 0.3275911, %v196_v30  ;;  %v248_v41 = vsub.f32 0.0, %v196_v30  ;;  %v255_v46 = vmul.f32 1.442695, %v250_v39 }
 0x118   :  { %475 = vrcp.f32 %v203_v31  ;;  %v257_v51 = vmul.f32 1.442695, %v251_v43 }
 0x119   :  { %v204_v33 = vadd.f32 1.0, %v200_v32  ;;  %v252_v49 = vmul.f32 %v248_v41, %v196_v30 }
 0x11b   :  { %477 = vrcp.f32 %v204_v33  ;;  %v259_v58 = vmul.f32 1.442695, %v252_v49 }
 0x11c   :  { %479 = vpow2.f32 %v253_v40 }
 0x11d   :  { %481 = vpow2.f32 %v255_v46 }
 0x11e   :  { %483 = vpow2.f32 %v257_v51 }
 0x11f   :  { %485 = vpow2.f32 %v259_v58  ;;  %v423_v58 = vld [vmem:[%s677_s4] ss:$0 sm:$0xff] }
 0x121   :  { %v472_v38 = vpop.eup %471 }
 0x122   :  { %v209_v42 = vmul.f32 1.0614054, %v472_v38 }
 0x123   :  { %v474_v44 = vpop.eup %473 }
 0x124   :  { %v213_v45 = vadd.f32 -1.4531521, %v209_v42  ;;  %v210_v47 = vmul.f32 1.0614054, %v474_v44 }
 0x125   :  { %v476_v48 = vpop.eup %475 }
 0x126   :  { %v217_v50 = vmul.f32 %v472_v38, %v213_v45  ;;  %v214_v52 = vadd.f32 -1.4531521, %v210_v47  ;;  %v211_v53 = vmul.f32 1.0614054, %v476_v48  ;;  %v186_v47 = vmul.f32 0.5, %v637_v14 }
 0x128   :  { %v221_v54 = vadd.f32 1.4214138, %v217_v50  ;;  %v478_v55 = vpop.eup %477  ;;  %v218_v56 = vmul.f32 %v474_v44, %v214_v52  ;;  %v215_v57 = vadd.f32 -1.4531521, %v211_v53 }
 0x129   :  { %v212_v60 = vmul.f32 1.0614054, %v478_v55  ;;  %v480_v16 = vpop.eup %479 }
 0x12a   :  { %v225_v59 = vmul.f32 %v472_v38, %v221_v54  ;;  %v222_v61 = vadd.f32 1.4214138, %v218_v56  ;;  %v219_v62 = vmul.f32 %v476_v48, %v215_v57  ;;  %v482_v28 = vpop.eup %481 }
 0x12b   :  { %v216_v0 = vadd.f32 -1.4531521, %v212_v60  ;;  %v484_v33 = vpop.eup %483 }
 0x12c   :  { %v229_v63 = vadd.f32 -0.28449672, %v225_v59  ;;  %v226_v1 = vmul.f32 %v474_v44, %v222_v61  ;;  %v223_v2 = vadd.f32 1.4214138, %v219_v62  ;;  %v486_v40 = vpop.eup %485 }
 0x12d   :  { %v220_v4 = vmul.f32 %v478_v55, %v216_v0 }
 0x12e   :  { %v233_v3 = vmul.f32 %v472_v38, %v229_v63  ;;  %v230_v5 = vadd.f32 -0.28449672, %v226_v1  ;;  %v227_v6 = vmul.f32 %v476_v48, %v223_v2 }
 0x12f   :  { %v224_v8 = vadd.f32 1.4214138, %v220_v4 }
 0x130   :  { %v237_v7 = vadd.f32 0.2548296, %v233_v3  ;;  %v234_v9 = vmul.f32 %v474_v44, %v230_v5  ;;  %v231_v10 = vadd.f32 -0.28449672, %v227_v6 }
 0x131   :  { %v228_v15 = vmul.f32 %v478_v55, %v224_v8 }
 0x132   :  { %v241_v12 = vmul.f32 %v472_v38, %v237_v7  ;;  %v238_v19 = vadd.f32 0.2548296, %v234_v9  ;;  %v235_v20 = vmul.f32 %v476_v48, %v231_v10 }
 0x133   :  { %v232_v24 = vadd.f32 -0.28449672, %v228_v15 }
 0x134   :  { %v261_v21 = vmul.f32 %v480_v16, %v241_v12  ;;  %v242_v25 = vmul.f32 %v474_v44, %v238_v19  ;;  %v239_v26 = vadd.f32 0.2548296, %v235_v20 }
 0x135   :  { %v236_v30 = vmul.f32 %v478_v55, %v232_v24 }
 0x136   :  { %v265_v29 = vsub.f32 1.0, %v261_v21  ;;  %v262_v31 = vmul.f32 %v482_v28, %v242_v25  ;;  %v243_v32 = vmul.f32 %v476_v48, %v239_v26 }
 0x137   :  { %v240_v35 = vadd.f32 0.2548296, %v236_v30 }
 0x138   :  { %v273_v34 = vsub.f32 0.0, %v265_v29  ;;  %v266_v36 = vsub.f32 1.0, %v262_v31  ;;  %v263_v37 = vmul.f32 %v484_v33, %v243_v32 }
 0x139   :  { %v244_v39 = vmul.f32 %v478_v55, %v240_v35  ;;  %v188_v55 = vmul.f32 0.5, %v649_v23 }
 0x13a   :  { %v277_v38 = vsel %vm269_vm0, %v273_v34, %v265_v29  ;;  %v274_v41 = vsub.f32 0.0, %v266_v36  ;;  %v267_v42 = vsub.f32 1.0, %v263_v37 }
 0x13b   :  { %v264_v43 = vmul.f32 %v486_v40, %v244_v39  ;;  %v281_v45 = vadd.f32 1.0, %v277_v38 }
 0x13c   :  { %v278_v44 = vsel %vm270_vm1, %v274_v41, %v266_v36  ;;  %v275_v46 = vsub.f32 0.0, %v267_v42 }
 0x13d   :  { %v282_v48 = vadd.f32 1.0, %v278_v44  ;;  %v268_v49 = vsub.f32 1.0, %v264_v43  ;;  %v285_v53 = vmul.f32 %v281_v45, %v185_v13 }
 0x13e   :  { %v279_v50 = vsel %vm271_vm2, %v275_v46, %v267_v42 }
 0x13f   :  { %v286_v51 = vmul.f32 %v282_v48, %v186_v47  ;;  %v276_v52 = vsub.f32 0.0, %v268_v49  ;;  %v283_v54 = vadd.f32 1.0, %v279_v50 }
 0x141   :  { %392 = vmatprep.mubr.f32.mxu1 %v286_v51  ;;  %v280_v17 = vsel %vm272_vm3, %v276_v52, %v268_v49  ;;  %v287_v57 = vmul.f32 %v283_v54, %v187_v22 }
 0x142   :  { %393 = vmatmul.mubr.f32.vlgmr.msra.gmra.mxu1 %v285_v53  ;;  %v284_v56 = vadd.f32 1.0, %v280_v17 }
 0x144   :  { %v288_v14 = vmul.f32 %v284_v56, %v188_v55 }
 0x146   :  { %397 = vmatprep.mubr.f32.mxu1 %v288_v14 }
 0x147   :  { %398 = vmatmul.mubr.f32.gmra.mxu1 %v287_v57 }
 0x202   :  { %v456_v11 = vpop.f32.mrf.mxu1 }
 0x204   :  { %v457_v27 = vpop.f32.mrf.mxu1 }
 0x205   :  { %v458_v59 = vadd.f32 %v457_v27, %v456_v11 }
 0x207   :  { %v395_v60 = vadd.f32 %v458_v59, %v423_v58  ;;  %v459_v61 = vpop.f32.mrf.mxu1 }
 0x209   :  { %403 = vst [vmem:[#allocation8] sm:$0xff] %v395_v60  ;;  %v460_v62 = vpop.f32.mrf.mxu1 }
 0x20a   :  { %v461_v23 = vadd.f32 %v460_v62, %v459_v61 }
 0x20c   :  { %v400_v63 = vadd.f32 %v461_v23, %v423_v58 }
 0x20e   :  { %404 = vst [vmem:[#allocation8 + $0x8] sm:$0xff] %v400_v63 }
 0x20f   :  { %558 = shalt.err (!%p555_p5)
}
 0x210   :  { %416 = dma.vmem_to_hbm [thread:$0]  %s411_s13, 256, %s678_s5, [#allocation4], %s577_s28, %s577_s28, %s578_s29  }
 0x211   :  { %571 = dma.done.wait [#allocation4], 256  }
 0x212   :  { %572 = vsyncadd [#allocation4], 4294967040 }
 0x213   :  { %420 = vsyncpa [#allocation3], 1 }
 0x214   :  { %421 = vsyncpa [#allocation6], 1 }
 0x215   :  { %422 = vsyncpa [#allocation4], 1 }

</bundles_post_ra>
